<compile_context>
chip_gen: v5e
topology: v5e:2x2
jax: 0.10.0
libtpu: 0.0.40
codegen_flags: <defaults>
</compile_context>

<pallas_src>
import jax
import jax.numpy as jnp
from jax.experimental import pallas as pl
from jax.experimental.pallas import tpu as pltpu

# CLIP (clip-rsicd-v2) feature-extractor normalization constants.
CLIP_MEAN = (0.48145466, 0.4578275, 0.40821073)
CLIP_STD = (0.26862954, 0.26130258, 0.27777711)


def _bilinear_matrix(out_size: int, in_size: int) -> jnp.ndarray:
    """(out_size, in_size) bilinear interpolation weight matrix, half-pixel centers."""
    scale = in_size / out_size
    dst = jnp.arange(out_size, dtype=jnp.float32)
    src = (dst + 0.5) * scale - 0.5
    src = jnp.clip(src, 0.0, float(in_size - 1))
    i0 = jnp.floor(src).astype(jnp.int32)
    i1 = jnp.minimum(i0 + 1, in_size - 1)
    frac = src - i0.astype(jnp.float32)
    rows = jnp.arange(out_size)
    w = jnp.zeros((out_size, in_size), jnp.float32)
    w = w.at[rows, i0].add(1.0 - frac)
    w = w.at[rows, i1].add(frac)
    return w


def _pick_images_per_block(B, C, H, W, out_h, out_w, bytes_per_px, max_bb=8):
    """Largest divisor of B (<= max_bb) whose per-step VMEM stays conservative."""
    per_img = (2 * C * H * W * bytes_per_px          # double-buffered input
               + 2 * C * out_h * out_w * 4           # double-buffered f32 output
               + C * H * out_w * 4                   # f32 intermediate (W-resized)
               + C * out_h * out_w * 4)              # f32 result before store
    budget = 12 * 1024 * 1024                        # safe under default scoped VMEM
    for bb in range(min(B, max_bb), 0, -1):
        if B % bb == 0 and bb * per_img <= budget:
            return bb
    return 1


def _image_proc_kernel(img_ref, wxt_ref, wybd_ref, bias_ref, out_ref):
    # img_ref block: (bb, C*H_in, W_in) in uint8/bf16.
    wxt = wxt_ref[...]        # (W_in, W_out)  bf16
    wybd = wybd_ref[...]      # (C*H_out, C*H_in) bf16, (1/255 * 1/std) folded in
    bias = bias_ref[...]      # (C*H_out, 1) f32  == -mean/std

    bb = img_ref.shape[0]
    for i in range(bb):       # static unroll: independent matmul chains per image
        x = img_ref[i]                                     # (C*H_in, W_in)
        if jnp.issubdtype(x.dtype, jnp.integer):
            x = x.astype(jnp.int32)                        # safe widening of uint8
        x = x.astype(jnp.float32).astype(jnp.bfloat16)     # uint8 -> bf16 is exact

        # Resize along W: (C*H_in, W_in) @ (W_in, W_out) -- wide M dim fills the MXU.
        t = jnp.dot(x, wxt, preferred_element_type=jnp.float32)
        # Resize along H for every channel at once via block-diagonal Wy (scale folded):
        r = jnp.dot(wybd, t.astype(jnp.bfloat16),
                    preferred_element_type=jnp.float32)    # (C*H_out, W_out)

        out_ref[i] = r + bias                              # normalize bias only


def clip_image_processing(img_nchw: jnp.ndarray, out_size: int = 8) -> jnp.ndarray:
    """Pallas equivalent of ImageProcessing(augment_images=False).forward.

    img_nchw: (B, C, H, W) raw pixel values (0..255), integer or float dtype.
    Returns squeezed (B, C, out_size, out_size) float32 (size-1 dims squeezed,
    matching numpy.squeeze in the original module).
    """
    B, C, H, W = img_nchw.shape
    out_h = out_w = out_size

    # Stream pixels at low precision; cast happens inside the kernel.
    if jnp.issubdtype(img_nchw.dtype, jnp.integer):
        img_in = img_nchw.astype(jnp.uint8)      # raw 0..255 pixels, 1 byte/px
        px_bytes = 1
    else:
        img_in = img_nchw.astype(jnp.bfloat16)   # float pixel inputs
        px_bytes = 2
    # Channel-flattened layout (free, contiguous reshape): (B, C*H, W).
    img_in = img_in.reshape(B, C * H, W)

    bb = _pick_images_per_block(B, C, H, W, out_h, out_w, px_bytes)

    # Interpolation matrices (bf16 operands for the MXU, f32 accumulation).
    wy = _bilinear_matrix(out_h, H)                               # (H_out, H_in)
    wxt = _bilinear_matrix(out_w, W).T                            # (W_in, W_out)
    wy_bd = jnp.kron(jnp.eye(C, dtype=jnp.float32), wy)           # (C*H_out, C*H_in)

    # Fold rescale(1/255) + per-channel 1/std into the rows of Wy_blockdiag:
    #   out = (scale * Wy_bd) @ (X @ Wx^T) + bias,   bias = -mean/std
    mean = jnp.asarray(CLIP_MEAN[:C], jnp.float32)
    istd = 1.0 / jnp.asarray(CLIP_STD[:C], jnp.float32)
    scale_col = jnp.repeat(istd / 255.0, out_h)[:, None]          # (C*H_out, 1)
    bias_col = jnp.repeat(-mean * istd, out_h)[:, None]           # (C*H_out, 1)

    wxt_bf = wxt.astype(jnp.bfloat16)
    wy_bd_bf = (wy_bd * scale_col).astype(jnp.bfloat16)

    out = pl.pallas_call(
        _image_proc_kernel,
        out_shape=jax.ShapeDtypeStruct((B, C * out_h, out_w), jnp.float32),
        grid=(B // bb,),
        in_specs=[
            pl.BlockSpec((bb, C * H, W), lambda b: (b, 0, 0)),
            pl.BlockSpec((W, out_w), lambda b: (0, 0)),
            pl.BlockSpec((C * out_h, C * H), lambda b: (0, 0)),
            pl.BlockSpec((C * out_h, 1), lambda b: (0, 0)),
        ],
        out_specs=pl.BlockSpec((bb, C * out_h, out_w), lambda b: (b, 0, 0)),
        compiler_params=pltpu.CompilerParams(
            # batch axis parallel -> multi-TensorCore chips split the batch.
            dimension_semantics=("parallel",)),
    )(img_in, wxt_bf, wy_bd_bf, bias_col)

    out = out.reshape(B, C, out_h, out_w)
    # numpy.squeeze on the feature extractor output
    return jnp.squeeze(out)


def _reference(img_nchw, out_size=8):
    """Pure-JAX f32 reference for correctness checking."""
    B, C, H, W = img_nchw.shape
    wy = _bilinear_matrix(out_size, H)
    wxt = _bilinear_matrix(out_size, W).T
    x = img_nchw.astype(jnp.float32) / 255.0
    resized = jnp.einsum('oh,bchw,wx->bcox', wy, x, wxt)
    mean = jnp.asarray(CLIP_MEAN[:C], jnp.float32).reshape(1, C, 1, 1)
    std = jnp.asarray(CLIP_STD[:C], jnp.float32).reshape(1, C, 1, 1)
    return jnp.squeeze((resized - mean) / std)


if __name__ == "__main__":
    key = jax.random.PRNGKey(0)
    # Small synthetic "image" batch: B=2, C=3 (RGB), 16x16 spatial, uint8 pixels.
    img = jax.random.randint(key, (2, 3, 16, 16), 0, 256, dtype=jnp.int32).astype(jnp.uint8)

    out = clip_image_processing(img, out_size=8)
    out = jax.block_until_ready(out)

    ref = jax.block_until_ready(_reference(img, out_size=8))
    assert out.shape == ref.shape == (2, 3, 8, 8), out.shape
    # bf16 matmul operands (f32 accumulation) -> loosened tolerance vs f32 reference.
    assert jnp.allclose(out, ref, atol=2e-2, rtol=2e-2), "mismatch vs reference"

    print("KERNEL_OK")
</pallas_src>

<mosaic_0001>
module attributes {stable_mosaic.version = 11 : i64} {
  func.func @_image_proc_kernel(%arg0: i32, %arg1: memref<2x48x16xi8, #tpu.memory_space<vmem>>, %arg2: memref<16x8xbf16, #tpu.memory_space<vmem>>, %arg3: memref<24x48xbf16, #tpu.memory_space<vmem>>, %arg4: memref<24x1xf32, #tpu.memory_space<vmem>>, %arg5: memref<2x24x8xf32, #tpu.memory_space<vmem>>) attributes {dimension_semantics = [#tpu.dimension_semantics<parallel>], iteration_bounds = array<i64: 1>, scalar_prefetch = 0 : i64, scratch_operands = 0 : i64, tpu.core_type = #tpu.core_type<tc>, window_params = [{transform_indices = @transform_0, window_bounds = array<i64: 2, 48, 16>}, {pipeline_mode = #tpu.pipeline_mode<synchronous>, transform_indices = @transform_1, window_bounds = array<i64: 16, 8>}, {pipeline_mode = #tpu.pipeline_mode<synchronous>, transform_indices = @transform_2, window_bounds = array<i64: 24, 48>}, {pipeline_mode = #tpu.pipeline_mode<synchronous>, transform_indices = @transform_3, window_bounds = array<i64: 24, 1>}, {transform_indices = @transform_4, window_bounds = array<i64: 2, 24, 8>}]} {
    %c0 = arith.constant 0 : index
    %c0_0 = arith.constant 0 : index
    %0 = vector.load %arg2[%c0, %c0_0] : memref<16x8xbf16, #tpu.memory_space<vmem>>, vector<16x8xbf16>
    %c0_1 = arith.constant 0 : index
    %c0_2 = arith.constant 0 : index
    %1 = vector.load %arg3[%c0_1, %c0_2] : memref<24x48xbf16, #tpu.memory_space<vmem>>, vector<24x48xbf16>
    %c0_3 = arith.constant 0 : index
    %c0_4 = arith.constant 0 : index
    %2 = vector.load %arg4[%c0_3, %c0_4] : memref<24x1xf32, #tpu.memory_space<vmem>>, vector<24x1xf32>
    %c0_5 = arith.constant 0 : index
    %c0_6 = arith.constant 0 : index
    %c0_7 = arith.constant 0 : index
    %3 = vector.load %arg1[%c0_5, %c0_6, %c0_7] : memref<2x48x16xi8, #tpu.memory_space<vmem>>, vector<1x48x16xi8>
    %4 = vector.shape_cast %3 : vector<1x48x16xi8> to vector<48x16xi8>
    %5 = arith.extui %4 : vector<48x16xi8> to vector<48x16xi32>
    %6 = arith.sitofp %5 : vector<48x16xi32> to vector<48x16xf32>
    %7 = arith.truncf %6 : vector<48x16xf32> to vector<48x16xbf16>
    %cst = arith.constant dense<0.000000e+00> : vector<48x8xf32>
    %8 = tpu.matmul %7, %0, %cst {dimension_numbers = #tpu.dot_dimension_numbers<[1], [0], [0], [1], [0, 0, 1, 1], [], []>} : vector<48x16xbf16>, vector<16x8xbf16>, vector<48x8xf32> -> vector<48x8xf32>
    %9 = arith.truncf %8 : vector<48x8xf32> to vector<48x8xbf16>
    %cst_8 = arith.constant dense<0.000000e+00> : vector<24x8xf32>
    %10 = tpu.matmul %1, %9, %cst_8 {dimension_numbers = #tpu.dot_dimension_numbers<[1], [0], [0], [1], [0, 0, 1, 1], [], []>} : vector<24x48xbf16>, vector<48x8xbf16>, vector<24x8xf32> -> vector<24x8xf32>
    %11 = vector.broadcast %2 : vector<24x1xf32> to vector<24x8xf32>
    %12 = arith.addf %10, %11 : vector<24x8xf32>
    %c0_9 = arith.constant 0 : index
    %c0_10 = arith.constant 0 : index
    %c0_11 = arith.constant 0 : index
    %13 = vector.load %arg5[%c0_9, %c0_10, %c0_11] : memref<2x24x8xf32, #tpu.memory_space<vmem>>, vector<1x24x8xf32>
    %14 = vector.shape_cast %13 : vector<1x24x8xf32> to vector<24x8xf32>
    %15 = vector.shape_cast %12 : vector<24x8xf32> to vector<1x24x8xf32>
    tpu.vector_store %arg5[%c0_9, %c0_10, %c0_11], %15 {strides = array<i32>} : memref<2x24x8xf32, #tpu.memory_space<vmem>>, vector<1x24x8xf32>,
    %c1 = arith.constant 1 : index
    %c0_12 = arith.constant 0 : index
    %c0_13 = arith.constant 0 : index
    %16 = vector.load %arg1[%c1, %c0_12, %c0_13] : memref<2x48x16xi8, #tpu.memory_space<vmem>>, vector<1x48x16xi8>
    %17 = vector.shape_cast %16 : vector<1x48x16xi8> to vector<48x16xi8>
    %18 = arith.extui %17 : vector<48x16xi8> to vector<48x16xi32>
    %19 = arith.sitofp %18 : vector<48x16xi32> to vector<48x16xf32>
    %20 = arith.truncf %19 : vector<48x16xf32> to vector<48x16xbf16>
    %cst_14 = arith.constant dense<0.000000e+00> : vector<48x8xf32>
    %21 = tpu.matmul %20, %0, %cst_14 {dimension_numbers = #tpu.dot_dimension_numbers<[1], [0], [0], [1], [0, 0, 1, 1], [], []>} : vector<48x16xbf16>, vector<16x8xbf16>, vector<48x8xf32> -> vector<48x8xf32>
    %22 = arith.truncf %21 : vector<48x8xf32> to vector<48x8xbf16>
    %cst_15 = arith.constant dense<0.000000e+00> : vector<24x8xf32>
    %23 = tpu.matmul %1, %22, %cst_15 {dimension_numbers = #tpu.dot_dimension_numbers<[1], [0], [0], [1], [0, 0, 1, 1], [], []>} : vector<24x48xbf16>, vector<48x8xbf16>, vector<24x8xf32> -> vector<24x8xf32>
    %24 = vector.broadcast %2 : vector<24x1xf32> to vector<24x8xf32>
    %25 = arith.addf %23, %24 : vector<24x8xf32>
    %c1_16 = arith.constant 1 : index
    %c0_17 = arith.constant 0 : index
    %c0_18 = arith.constant 0 : index
    %26 = vector.load %arg5[%c1_16, %c0_17, %c0_18] : memref<2x24x8xf32, #tpu.memory_space<vmem>>, vector<1x24x8xf32>
    %27 = vector.shape_cast %26 : vector<1x24x8xf32> to vector<24x8xf32>
    %28 = vector.shape_cast %25 : vector<24x8xf32> to vector<1x24x8xf32>
    tpu.vector_store %arg5[%c1_16, %c0_17, %c0_18], %28 {strides = array<i32>} : memref<2x24x8xf32, #tpu.memory_space<vmem>>, vector<1x24x8xf32>,
    return
  }
  func.func @transform_0(%arg0: i32) -> (i32, i32, i32) {
    %c0_i32 = arith.constant 0 : i32
    %c0_i32_0 = arith.constant 0 : i32
    %c0_i32_1 = arith.constant 0 : i32
    return %arg0, %c0_i32, %c0_i32_0 : i32, i32, i32
  }
  func.func @transform_1(%arg0: i32) -> (i32, i32) {
    %c0_i32 = arith.constant 0 : i32
    %c0_i32_0 = arith.constant 0 : i32
    %c0_i32_1 = arith.constant 0 : i32
    return %c0_i32, %c0_i32_0 : i32, i32
  }
  func.func @transform_2(%arg0: i32) -> (i32, i32) {
    %c0_i32 = arith.constant 0 : i32
    %c0_i32_0 = arith.constant 0 : i32
    %c0_i32_1 = arith.constant 0 : i32
    return %c0_i32, %c0_i32_0 : i32, i32
  }
  func.func @transform_3(%arg0: i32) -> (i32, i32) {
    %c0_i32 = arith.constant 0 : i32
    %c0_i32_0 = arith.constant 0 : i32
    %c0_i32_1 = arith.constant 0 : i32
    return %c0_i32, %c0_i32_0 : i32, i32
  }
  func.func @transform_4(%arg0: i32) -> (i32, i32, i32) {
    %c0_i32 = arith.constant 0 : i32
    %c0_i32_0 = arith.constant 0 : i32
    %c0_i32_1 = arith.constant 0 : i32
    return %arg0, %c0_i32, %c0_i32_0 : i32, i32, i32
  }
}

</mosaic_0001>

<bundles_post_ra>
// kernel: tpu_custom_call.1
= control target key start
LH: loop header
LB: loop body
LE: loop exit
PB: predicated region body
PF: predicated region fallthrough
CT: control target
= control target key end

     0   :  { %vm59_vm0 = vcmask 130048   ;;  %v299_v55 = vmov 0   ;;  %vm119_vm1 = vcmask 392192   ;;  %vm144_vm2 = vcmask 64512   ;;  %s385_s1 = inlined_call_operand.vmem [shape: bf16[16,8], index: 1, kind: input, shape index: {}]   ;;  %s386_s0 = inlined_call_operand.vmem [shape: u8[2,48,16], index: 0, kind: input, shape index: {}]   ;;  %s387_s3 = inlined_call_operand.vmem [shape: f32[24,1], index: 3, kind: input, shape index: {}]   ;;  %s388_s2 = inlined_call_operand.vmem [shape: bf16[24,48], index: 2, kind: input, shape index: {}]   ;;  %s389_s4 = inlined_call_operand.vmem [shape: f32[2,24,8], index: 4, kind: output, shape index: {}]  }
   0x1   :  { %v265_v0 = vld [vmem:[%s385_s1] sm:$0xff]  ;;  %v293_v2 = vld [vmem:[%s386_s0 + $0xc] sm:$0xff]   ;;  %v292_v31 = vld [vmem:[%s386_s0 + $0x8] sm:$0xf]   ;;  %297 = vset.pattern.permute.xlu0 %v299_v55  ;;  %298 = vset.pattern.permute.xlu1 %v299_v55 }
   0x2   :  { %v268_v1 = vld [vmem:[%s386_s0] sm:$0xff]   ;;  %v281_v5 = vunpack.c.0.s8 %v293_v2  ;;  %v282_v6 = vunpack.c.1.s8 %v293_v2  ;;  %76 = vmatpush.bf16.msra.mxu0 %v265_v0  ;;  %192 = vmatpush.bf16.msra.mxu2 %v265_v0  ;;  %v285_v19 = vunpack.c.2.s8 %v293_v2  ;;  %v286_v20 = vunpack.c.3.s8 %v293_v2  ;;  %v295_v32 = vld [vmem:[%s386_s0 + $0x14] sm:$0xf]   ;;  %v24_v61 = vld [vmem:[%s387_s3 + $0x8] sm:$0xff] }
   0x3   :  { %v269_v3 = vunpack.c.0.s8 %v268_v1  ;;  %v270_v4 = vunpack.c.1.s8 %v268_v1  ;;  %v273_v17 = vunpack.c.2.s8 %v268_v1  ;;  %v274_v18 = vunpack.c.3.s8 %v268_v1  ;;  %v23_v54 = vld [vmem:[%s387_s3] sm:$0xff]  ;;  %v25_v62 = vld [vmem:[%s387_s3 + $0x10] sm:$0xff] }
   0x4   :  { %v161_v9 = vand.u32 255, %v281_v5  ;;  %v162_v10 = vand.u32 255, %v282_v6  ;;  %v163_v23 = vand.u32 255, %v285_v19  ;;  %v164_v24 = vand.u32 255, %v286_v20  ;;  %98 = vperm.xlu0 %297, %v23_v54   ;;  %108 = vperm.xlu1 %298, %v25_v62   ;;  %v22_v6 = vld [vmem:[%s388_s2 + $0x8] sm:$0xf] }
   0x5   :  { %v38_v7 = vand.u32 255, %v269_v3  ;;  %v39_v8 = vand.u32 255, %v270_v4  ;;  %v40_v21 = vand.u32 255, %v273_v17  ;;  %v41_v22 = vand.u32 255, %v274_v18  ;;  %v266_v3 = vld [vmem:[%s388_s2] sm:$0xff] }
   0x6   :  { %v167_v13 = vcvt.s32.f32 %v161_v9  ;;  %v168_v14 = vcvt.s32.f32 %v162_v10  ;;  %v169_v27 = vcvt.s32.f32 %v163_v23  ;;  %v170_v28 = vcvt.s32.f32 %v164_v24 }
   0x7   :  { %v44_v11 = vcvt.s32.f32 %v38_v7  ;;  %v45_v12 = vcvt.s32.f32 %v39_v8  ;;  %v46_v25 = vcvt.s32.f32 %v40_v21  ;;  %v47_v26 = vcvt.s32.f32 %v41_v22 }
   0x8   :  { %v173_v16 = vpack.c.bf16 %v168_v14, %v167_v13  ;;  %v174_v30 = vpack.c.bf16 %v170_v28, %v169_v27  ;;  %v277_v33 = vunpack.c.0.s8 %v292_v31  ;;  %v278_v34 = vunpack.c.1.s8 %v292_v31 }
   0x9   :  { %v50_v15 = vpack.c.bf16 %v45_v12, %v44_v11  ;;  %v51_v29 = vpack.c.bf16 %v47_v26, %v46_v25  ;;  %v289_v35 = vunpack.c.0.s8 %v295_v32  ;;  %v290_v36 = vunpack.c.1.s8 %v295_v32 }
   0xa   :  { %257 = vmatmul.msk.bf16.vlgmr.msra.gmra.mxu2 %vm59_vm0, %v173_v16  ;;  %v42_v37 = vand.u32 255, %v277_v33  ;;  %v43_v38 = vand.u32 255, %v278_v34  ;;  %v116_v7 = vunpack.c.l.b16 %v22_v6 }
   0xb   :  { %242 = vmatmul.msk.bf16.vlgmr.msra.gmra.mxu0 %vm59_vm0, %v50_v15  ;;  %v165_v39 = vand.u32 255, %v289_v35  ;;  %v166_v40 = vand.u32 255, %v290_v36 }
   0xc   :  { %v48_v41 = vcvt.s32.f32 %v42_v37  ;;  %v49_v42 = vcvt.s32.f32 %v43_v38  ;;  %103 = vperm.xlu0 %297, %v24_v61   ;;  %v118_v8 = vpack.c.b16 %v116_v7, %v116_v7 }
   0xd   :  { %v171_v43 = vcvt.s32.f32 %v165_v39  ;;  %v172_v44 = vcvt.s32.f32 %v166_v40 }
   0xe   :  { %v52_v45 = vpack.c.bf16 %v49_v42, %v48_v41 }
   0xf   :  { %v175_v46 = vpack.c.bf16 %v172_v44, %v171_v43 }
  0x1a   :  { %258 = vmatmul.msk.bf16.gmra.mxu2 %vm59_vm0, %v174_v30 }
  0x1b   :  { %243 = vmatmul.msk.bf16.gmra.mxu0 %vm59_vm0, %v51_v29 }
  0x2a   :  { %259 = vmatmul.msk.bf16.gmra.mxu2 %vm59_vm0, %v175_v46 }
  0x2b   :  { %244 = vmatmul.msk.bf16.gmra.mxu0 %vm59_vm0, %v52_v45 }
  0x76   :  { %v99_v9 = vpop.permute.xlu0 %98  ;;  %v109_v17 = vpop.permute.xlu1 %108 }
  0x7e   :  { %v104_v12 = vpop.permute.xlu0 %103 }
  0x88   :  { %v78_v47 = vpop.f32.mrf.mxu0 }
  0x8d   :  { %v194_v48 = vpop.f32.mrf.mxu2 }
  0x90   :  { %v80_v49 = vpop.f32.mrf.mxu0 }
  0x91   :  { %v93_v2 = vpack.c.bf16 %v80_v49, %v78_v47 }
  0x95   :  { %v196_v50 = vpop.f32.mrf.mxu2 }
  0x96   :  { %v209_v5 = vpack.c.bf16 %v196_v50, %v194_v48 }
  0x98   :  { %v83_v51 = vpop.f32.mrf.mxu0 }
  0x9d   :  { %v199_v52 = vpop.f32.mrf.mxu2 }
  0xa0   :  { %v85_v53 = vpop.f32.mrf.mxu0 }
  0xa1   :  { %v94_v63 = vpack.c.bf16 %v85_v53, %v83_v51 }
  0xa5   :  { %v201_v56 = vpop.f32.mrf.mxu2 }
  0xa6   :  { %v210_v4 = vpack.c.bf16 %v201_v56, %v199_v52 }
  0xa8   :  { %v88_v57 = vpop.f32.mrf.mxu0 }
  0xad   :  { %v204_v58 = vpop.f32.mrf.mxu2 }
  0xb0   :  { %v90_v59 = vpop.f32.mrf.mxu0 }
  0xb1   :  { %v95_v60 = vpack.c.bf16 %v90_v59, %v88_v57 }
  0xb3   :  { %131 = vmatpush.bf16.msra.mxu1 %v95_v60 }
  0xb5   :  { %v206_v0 = vpop.f32.mrf.mxu2 }
  0xb6   :  { %v211_v1 = vpack.c.bf16 %v206_v0, %v204_v58 }
  0xb7   :  { %132 = vmatpush.bf16.msra.mxu1 %v94_v63 }
  0xb8   :  { %217 = vmatpush.bf16.msra.mxu3 %v211_v1 }
  0xbb   :  { %133 = vmatpush.bf16.msra.mxu1 %v93_v2 }
  0xbc   :  { %218 = vmatpush.bf16.msra.mxu3 %v210_v4 }
  0xbe   :  { %249 = vmatmul.msk.bf16.vlgmr.msra.gmra.mxu1 %vm119_vm1, %v266_v3 }
  0xc0   :  { %219 = vmatpush.bf16.msra.mxu3 %v209_v5 }
  0xc3   :  { %260 = vmatmul.msk.bf16.vlgmr.msra.gmra.mxu3 %vm119_vm1, %v266_v3 }
  0xce   :  { %250 = vmatmul.msk.bf16.gmra.mxu1 %vm119_vm1, %v118_v8 }
  0xd3   :  { %261 = vmatmul.msk.bf16.gmra.mxu3 %vm119_vm1, %v118_v8 }
 0x13b   :  { %v135_v10 = vpop.f32.mrf.mxu1 }
 0x13c   :  { %v136_v11 = vadd.f32 %v135_v10, %v99_v9 }
 0x13e   :  { %145 = vst.msk [vmem:[%s389_s4] sm:$0xff] %vm144_vm2, %v136_v11 }
 0x143   :  { %v137_v13 = vpop.f32.mrf.mxu1 }
 0x144   :  { %v138_v14 = vadd.f32 %v137_v13, %v104_v12 }
 0x146   :  { %146 = vst.msk [vmem:[%s389_s4 + $0x8] sm:$0xff] %vm144_vm2, %v138_v14  ;;  %v221_v15 = vpop.f32.mrf.mxu3 }
 0x147   :  { %v222_v16 = vadd.f32 %v221_v15, %v99_v9 }
 0x149   :  { %262 = vst.msk [vmem:[%s389_s4 + $0x18] sm:$0xff] %vm144_vm2, %v222_v16 }
 0x14b   :  { %v140_v18 = vpop.f32.mrf.mxu1 }
 0x14c   :  { %v141_v19 = vadd.f32 %v140_v18, %v109_v17 }
 0x14e   :  { %147 = vst.msk [vmem:[%s389_s4 + $0x10] sm:$0xff] %vm144_vm2, %v141_v19  ;;  %v223_v20 = vpop.f32.mrf.mxu3 }
 0x14f   :  { %v224_v21 = vadd.f32 %v223_v20, %v104_v12 }
 0x151   :  { %263 = vst.msk [vmem:[%s389_s4 + $0x20] sm:$0xff] %vm144_vm2, %v224_v21 }
 0x153   :  { %v142_v22 = vpop.f32.mrf.mxu1 }
 0x156   :  { %v226_v23 = vpop.f32.mrf.mxu3 }
 0x157   :  { %v227_v24 = vadd.f32 %v226_v23, %v109_v17 }
 0x159   :  { %264 = vst.msk [vmem:[%s389_s4 + $0x28] sm:$0xff] %vm144_vm2, %v227_v24 }
 0x15e   :  { %v228_v25 = vpop.f32.mrf.mxu3 }

</bundles_post_ra>
